<compile_context>
chip_gen: v7x
topology: tpu7x:2x2x1
jax: 0.10.0
libtpu: 0.0.40
codegen_flags: <defaults>
</compile_context>

<pallas_src>
import functools

import jax
import jax.numpy as jnp
from jax import lax
from jax.experimental import pallas as pl
from jax.experimental.pallas import tpu as pltpu


def _vmem_limit_bytes():
    """Generation-aware scoped-VMEM limit (half of physical, capped at 64 MiB)."""
    try:
        cap = getattr(pltpu.get_tpu_info(), "vmem_capacity_bytes", None)
        if cap:
            return int(min(cap // 2, 64 * 1024 * 1024))
    except Exception:
        pass
    return 32 * 1024 * 1024


_VMEM_LIMIT = _vmem_limit_bytes()


# ---------------------------------------------------------------------------
# Tiled, pipelined linear kernels:  out = x @ W (+ b)
# ---------------------------------------------------------------------------
def _matmul_kernel(x_ref, w_ref, o_ref, acc_ref):
    @pl.when(pl.program_id(2) == 0)
    def _():
        acc_ref[...] = jnp.zeros_like(acc_ref)

    acc_ref[...] += jnp.dot(
        x_ref[...], w_ref[...], preferred_element_type=jnp.float32
    )

    @pl.when(pl.program_id(2) == pl.num_programs(2) - 1)
    def _():
        o_ref[...] = acc_ref[...].astype(o_ref.dtype)


def _matmul_bias_kernel(x_ref, w_ref, b_ref, o_ref, acc_ref):
    @pl.when(pl.program_id(2) == 0)
    def _():
        acc_ref[...] = jnp.zeros_like(acc_ref)

    acc_ref[...] += jnp.dot(
        x_ref[...], w_ref[...], preferred_element_type=jnp.float32
    )

    @pl.when(pl.program_id(2) == pl.num_programs(2) - 1)
    def _():
        o_ref[...] = (acc_ref[...] + b_ref[...].astype(jnp.float32)).astype(o_ref.dtype)


def linear(x2d, w, b=None, *, bm=512, bn=512, bk=512):
    """x2d: (M, K), w: (K, Cout), optional b: (Cout,). Tiled + pipelined matmul."""
    M, K = x2d.shape
    Cout = w.shape[1]
    bm = min(bm, M)
    bn = min(bn, Cout)
    bk = min(bk, K)

    # Zero-pad to tile multiples (zeros are harmless for the K reduction).
    # For production shapes prefer tiles that divide M/K/Cout so this pad /
    # final slice (extra HBM passes outside the kernel) never triggers.
    Mp = -(-M // bm) * bm
    Kp = -(-K // bk) * bk
    Np = -(-Cout // bn) * bn
    if (Mp, Kp) != (M, K):
        x2d = jnp.pad(x2d, ((0, Mp - M), (0, Kp - K)))
    if (Kp, Np) != (K, Cout):
        w = jnp.pad(w, ((0, Kp - K), (0, Np - Cout)))

    grid = (Mp // bm, Np // bn, Kp // bk)
    compiler_params = pltpu.CompilerParams(
        dimension_semantics=("parallel", "parallel", "arbitrary"),
        vmem_limit_bytes=_VMEM_LIMIT,
    )
    common_in_specs = [
        pl.BlockSpec((bm, bk), lambda i, j, k: (i, k)),
        pl.BlockSpec((bk, bn), lambda i, j, k: (k, j)),
    ]
    out_spec = pl.BlockSpec((bm, bn), lambda i, j, k: (i, j))
    scratch = [pltpu.VMEM((bm, bn), jnp.float32)]

    if b is None:
        out = pl.pallas_call(
            _matmul_kernel,
            out_shape=jax.ShapeDtypeStruct((Mp, Np), x2d.dtype),
            grid=grid,
            in_specs=common_in_specs,
            out_specs=out_spec,
            scratch_shapes=scratch,
            compiler_params=compiler_params,
        )(x2d, w)
    else:
        b2d = b.reshape(1, Cout)
        if Np != Cout:
            b2d = jnp.pad(b2d, ((0, 0), (0, Np - Cout)))
        out = pl.pallas_call(
            _matmul_bias_kernel,
            out_shape=jax.ShapeDtypeStruct((Mp, Np), x2d.dtype),
            grid=grid,
            in_specs=common_in_specs + [pl.BlockSpec((1, bn), lambda i, j, k: (0, j))],
            out_specs=out_spec,
            scratch_shapes=scratch,
            compiler_params=compiler_params,
        )(x2d, w, b2d)

    if (Mp, Np) != (M, Cout):
        out = out[:M, :Cout]
    return out


# ---------------------------------------------------------------------------
# Fused q-projection + multi-head attention + output projection.
# Grid = (B, N // TQ); per step:
#   x:    (1, TQ, C)      query-tile of the input
#   kv:   (1, N2, 2C)     kv projection output: [k heads | v heads] (batch-resident)
#   bias: (1, 1, N2)      additive mask bias (0 keep, -1e30 pad), f32 (batch-resident)
#   wq:   (C, C), wp: (C, C), bp: (1, C)  -- resident weights
# Output: (1, TQ, C) lane-dense block per grid step.
# ---------------------------------------------------------------------------
def _fused_attn_kernel(x_ref, kv_ref, bias_ref, wq_ref, wp_ref, bp_ref, o_ref,
                       *, num_heads, head_dim, scale):
    C = num_heads * head_dim
    TQ = x_ref.shape[1]
    N2 = kv_ref.shape[1]

    x = x_ref[0]                       # (TQ, C), native dtype
    kv = kv_ref[0]                     # (N2, 2C), native dtype
    wp = wp_ref[...]                   # (C, C)

    # Fused q projection (wq is VMEM-resident). Fold the softmax scale into q:
    # TQ*C multiplies instead of TQ*N2 per head.
    q = jnp.dot(x, wq_ref[...], preferred_element_type=jnp.float32) * scale
    q = q.astype(kv.dtype)

    # Hoist the mask-bias broadcast out of the head loop (broadcast_in_dim is
    # not CSE'd by JAX; per-head it would be re-materialized num_heads times).
    bias = pl.broadcast_to(bias_ref[0], (TQ, N2))            # (TQ, N2) f32

    # Output-projection accumulator, seeded with the proj bias. Per-head
    # accumulation removes the (N, C) f32 ctx scratch and its masked 64-lane
    # column stores; same total MXU FLOPs.
    out = pl.broadcast_to(bp_ref[...].astype(jnp.float32), (TQ, C))

    # TODO(synk): for very large N2 replace the materialized (TQ, N2) score
    # tile with an online-softmax (flash) loop over N2 chunks; unnecessary for
    # the short-context cross-attention this module targets.
    for h in range(num_heads):          # static unroll over heads
        lo = h * head_dim
        q_h = q[:, lo:lo + head_dim]                  # (TQ, D)
        k_h = kv[:, lo:lo + head_dim]                 # (N2, D)
        v_h = kv[:, C + lo:C + lo + head_dim]         # (N2, D)

        # scores = q @ k^T without an explicit transpose (contract last dims).
        s = lax.dot_general(
            q_h, k_h,
            dimension_numbers=(((1,), (1,)), ((), ())),
            preferred_element_type=jnp.float32,
        )                                             # (TQ, N2) f32
        s = s + bias

        m = jnp.max(s, axis=-1, keepdims=True)
        p = jnp.exp(s - m)
        denom = jnp.sum(p, axis=-1, keepdims=True)
        o_h = jnp.dot(p.astype(kv.dtype), v_h,
                      preferred_element_type=jnp.float32)     # (TQ, D) f32
        o_h = o_h * pl.reciprocal(denom, approx=True)

        # Per-head slice of the output projection: (TQ, D) @ (D, C).
        out = out + jnp.dot(o_h.astype(wp.dtype), wp[lo:lo + head_dim, :],
                            preferred_element_type=jnp.float32)

    o_ref[0] = out.astype(o_ref.dtype)


def _pick_q_tile(n, target=256):
    """Largest query tile <= target that divides n and is sublane-aligned
    (multiple of 8); fall back to the full sequence per step."""
    if n <= target:
        return n
    for t in range(target, 7, -1):
        if n % t == 0 and t % 8 == 0:
            return t
    return n


def fused_q_attention_proj(x, kv, bias, wq, wp, bp2d, num_heads, scale):
    B, N, C = x.shape
    N2 = kv.shape[1]
    head_dim = C // num_heads
    TQ = _pick_q_tile(N)
    kernel = functools.partial(
        _fused_attn_kernel, num_heads=num_heads, head_dim=head_dim, scale=scale
    )
    # Note (v7x): wq/wp/bp have constant index maps; pl.Buffered(1) on those
    # specs would save one weight buffer of VMEM if headroom becomes tight.
    return pl.pallas_call(
        kernel,
        out_shape=jax.ShapeDtypeStruct((B, N, C), x.dtype),
        grid=(B, N // TQ),
        in_specs=[
            pl.BlockSpec((1, TQ, C), lambda b, qi: (b, qi, 0)),       # x tile
            pl.BlockSpec((1, N2, 2 * C), lambda b, qi: (b, 0, 0)),    # kv (batch-resident)
            pl.BlockSpec((1, 1, N2), lambda b, qi: (b, 0, 0)),        # mask bias
            pl.BlockSpec((C, C), lambda b, qi: (0, 0)),               # wq (resident)
            pl.BlockSpec((C, C), lambda b, qi: (0, 0)),               # wp (resident)
            pl.BlockSpec((1, C), lambda b, qi: (0, 0)),               # bp (resident)
        ],
        out_specs=pl.BlockSpec((1, TQ, C), lambda b, qi: (b, qi, 0)),
        compiler_params=pltpu.CompilerParams(
            dimension_semantics=("parallel", "arbitrary"),
            vmem_limit_bytes=_VMEM_LIMIT,
        ),
    )(x, kv, bias, wq, wp, bp2d)


# ---------------------------------------------------------------------------
# CrossAttention forward
# ---------------------------------------------------------------------------
def cross_attention_forward(x, y, params, num_heads, pad_mask=None):
    B, N, C = x.shape
    N2, Cy = y.shape[1], y.shape[2]
    head_dim = C // num_heads
    scale = head_dim ** (-0.5)

    # kv projection (qkv_bias=False -> no bias path). The q projection is
    # fused into the attention kernel (saves a full (B, N, C) HBM round trip).
    kv = linear(y.reshape(B * N2, Cy), params["wkv"]).reshape(B, N2, 2 * C)

    # q_norm / k_norm are Identity (qk_norm=False); dropout is a no-op in eval.
    # Additive mask bias: 0 where keep, -1e30 where pad (finite -> no NaN even
    # if a key row is fully padded; reference would produce NaN there).
    if pad_mask is None:
        bias = jnp.zeros((B, 1, N2), jnp.float32)
    else:
        bias = (pad_mask.astype(jnp.float32).reshape(B, 1, N2) - 1.0) * 1e30

    # Fused q-proj + attention + output projection (writes (B, N, C) directly;
    # no transposes or kv slicing in HBM).
    return fused_q_attention_proj(
        x, kv, bias, params["wq"], params["wp"], params["bp"].reshape(1, C),
        num_heads, scale,
    )


# Pure-JAX reference (sanity check of the Pallas path).
def cross_attention_reference(x, y, params, num_heads, pad_mask=None):
    B, N, C = x.shape
    N2 = y.shape[1]
    head_dim = C // num_heads
    scale = head_dim ** (-0.5)
    q = (x @ params["wq"]).reshape(B, N, num_heads, head_dim).transpose(0, 2, 1, 3)
    kv = (y @ params["wkv"]).reshape(B, N2, 2, num_heads, head_dim)
    k = kv[:, :, 0].transpose(0, 2, 1, 3)
    v = kv[:, :, 1].transpose(0, 2, 1, 3)
    s = (q * scale) @ jnp.swapaxes(k, -1, -2)
    if pad_mask is not None:
        s = jnp.where(pad_mask[:, None, None, :] > 0, s, -jnp.inf)
    p = jax.nn.softmax(s, axis=-1)
    o = (p @ v).transpose(0, 2, 1, 3).reshape(B, N, C)
    return o @ params["wp"] + params["bp"]


if __name__ == "__main__":
    # Small shapes consistent with the module's forward.
    B, N, N2 = 2, 16, 8
    dim, dim_y, num_heads = 32, 24, 4

    key = jax.random.PRNGKey(0)
    kx, ky, k1, k2, k3, k4 = jax.random.split(key, 6)

    x = jax.random.normal(kx, (B, N, dim), jnp.float32)
    y = jax.random.normal(ky, (B, N2, dim_y), jnp.float32)
    pad_mask = jnp.concatenate(
        [jnp.ones((B, N2 - 2), jnp.int32), jnp.zeros((B, 2), jnp.int32)], axis=1
    )

    # Deterministic parameters (stored already transposed: (in, out)).
    params = {
        "wq": jax.random.normal(k1, (dim, dim), jnp.float32) * 0.05,
        "wkv": jax.random.normal(k2, (dim_y, 2 * dim), jnp.float32) * 0.05,
        "wp": jax.random.normal(k3, (dim, dim), jnp.float32) * 0.05,
        "bp": jax.random.normal(k4, (dim,), jnp.float32) * 0.05,
    }

    out = cross_attention_forward(x, y, params, num_heads, pad_mask=pad_mask)
    out = jax.block_until_ready(out)

    ref = cross_attention_reference(x, y, params, num_heads, pad_mask=pad_mask)
    assert out.shape == (B, N, dim)
    # Tolerance relaxed slightly for the approx (EUP) reciprocal in softmax.
    assert jnp.allclose(out, ref, atol=2e-3, rtol=2e-3), "mismatch vs reference"

    print("KERNEL_OK")
</pallas_src>

<mosaic_0001>
module attributes {stable_mosaic.version = 11 : i64} {
  func.func @_matmul_kernel(%arg0: i32, %arg1: i32, %arg2: i32, %arg3: memref<16x24xf32, #tpu.memory_space<vmem>>, %arg4: memref<24x64xf32, #tpu.memory_space<vmem>>, %arg5: memref<16x64xf32, #tpu.memory_space<vmem>>, %arg6: memref<16x64xf32, #tpu.memory_space<vmem>>) attributes {dimension_semantics = [#tpu.dimension_semantics<parallel>, #tpu.dimension_semantics<parallel>, #tpu.dimension_semantics<arbitrary>], iteration_bounds = array<i64: 1, 1, 1>, scalar_prefetch = 0 : i64, scratch_operands = 1 : i64, tpu.core_type = #tpu.core_type<tc>, window_params = [{transform_indices = @transform_0, window_bounds = array<i64: 16, 24>}, {transform_indices = @transform_1, window_bounds = array<i64: 24, 64>}, {transform_indices = @transform_2, window_bounds = array<i64: 16, 64>}]} {
    %c0_i32 = arith.constant 0 : i32
    %0 = arith.cmpi eq, %arg2, %c0_i32 : i32
    %1 = arith.extui %0 : i1 to i32
    %c0_i32_0 = arith.constant 0 : i32
    %2 = arith.cmpi ne, %1, %c0_i32_0 : i32
    scf.if %2 {
      %cst_10 = arith.constant 0.000000e+00 : f32
      %12 = vector.broadcast %cst_10 : f32 to vector<16x64xf32>
      %c0_11 = arith.constant 0 : index
      %c0_12 = arith.constant 0 : index
      %13 = vector.load %arg6[%c0_11, %c0_12] : memref<16x64xf32, #tpu.memory_space<vmem>>, vector<16x64xf32>
      tpu.vector_store %arg6[%c0_11, %c0_12], %12 {strides = array<i32>} : memref<16x64xf32, #tpu.memory_space<vmem>>, vector<16x64xf32>,
    } else {
    }
    %c0 = arith.constant 0 : index
    %c0_1 = arith.constant 0 : index
    %3 = vector.load %arg6[%c0, %c0_1] : memref<16x64xf32, #tpu.memory_space<vmem>>, vector<16x64xf32>
    %c0_2 = arith.constant 0 : index
    %c0_3 = arith.constant 0 : index
    %4 = vector.load %arg3[%c0_2, %c0_3] : memref<16x24xf32, #tpu.memory_space<vmem>>, vector<16x24xf32>
    %c0_4 = arith.constant 0 : index
    %c0_5 = arith.constant 0 : index
    %5 = vector.load %arg4[%c0_4, %c0_5] : memref<24x64xf32, #tpu.memory_space<vmem>>, vector<24x64xf32>
    %cst = arith.constant dense<0.000000e+00> : vector<16x64xf32>
    %6 = tpu.matmul %4, %5, %cst {dimension_numbers = #tpu.dot_dimension_numbers<[1], [0], [0], [1], [0, 0, 1, 1], [], []>} : vector<16x24xf32>, vector<24x64xf32>, vector<16x64xf32> -> vector<16x64xf32>
    %7 = arith.addf %3, %6 : vector<16x64xf32>
    %c0_6 = arith.constant 0 : index
    %c0_7 = arith.constant 0 : index
    %8 = vector.load %arg6[%c0_6, %c0_7] : memref<16x64xf32, #tpu.memory_space<vmem>>, vector<16x64xf32>
    tpu.vector_store %arg6[%c0_6, %c0_7], %7 {strides = array<i32>} : memref<16x64xf32, #tpu.memory_space<vmem>>, vector<16x64xf32>,
    %c0_i32_8 = arith.constant 0 : i32
    %9 = arith.cmpi eq, %arg2, %c0_i32_8 : i32
    %10 = arith.extui %9 : i1 to i32
    %c0_i32_9 = arith.constant 0 : i32
    %11 = arith.cmpi ne, %10, %c0_i32_9 : i32
    scf.if %11 {
      %c0_10 = arith.constant 0 : index
      %c0_11 = arith.constant 0 : index
      %12 = vector.load %arg6[%c0_10, %c0_11] : memref<16x64xf32, #tpu.memory_space<vmem>>, vector<16x64xf32>
      %c0_12 = arith.constant 0 : index
      %c0_13 = arith.constant 0 : index
      %13 = vector.load %arg5[%c0_12, %c0_13] : memref<16x64xf32, #tpu.memory_space<vmem>>, vector<16x64xf32>
      tpu.vector_store %arg5[%c0_12, %c0_13], %12 {strides = array<i32>} : memref<16x64xf32, #tpu.memory_space<vmem>>, vector<16x64xf32>,
    } else {
    }
    return
  }
  func.func @transform_0(%arg0: i32, %arg1: i32, %arg2: i32) -> (i32, i32) {
    %c0_i32 = arith.constant 0 : i32
    return %arg0, %arg2 : i32, i32
  }
  func.func @transform_1(%arg0: i32, %arg1: i32, %arg2: i32) -> (i32, i32) {
    %c0_i32 = arith.constant 0 : i32
    return %arg2, %arg1 : i32, i32
  }
  func.func @transform_2(%arg0: i32, %arg1: i32, %arg2: i32) -> (i32, i32) {
    %c0_i32 = arith.constant 0 : i32
    return %arg0, %arg1 : i32, i32
  }
}

</mosaic_0001>

<bundles_post_ra>
// kernel: tpu_custom_call.1
= control target key start
LH: loop header
LB: loop body
LE: loop exit
PB: predicated region body
PF: predicated region fallthrough
CT: control target
= control target key end

     0   :  { %7 = vsyncpa [#allocation4], 0  ;;  %s336_s0 = inlined_call_operand.hbm [shape: f32[16,24], index: 0, kind: input, shape index: {}]   ;;  %s337_s1 = inlined_call_operand.hbm [shape: f32[24,64], index: 1, kind: input, shape index: {}]   ;;  %s338_s2 = inlined_call_operand.hbm [shape: f32[16,64], index: 2, kind: output, shape index: {}]  }
   0x1   :  { %8 = vsyncpa [#allocation7], 0 }
   0x2   :  { %9 = vsyncpa [#allocation5], 0  ;;  %s264_s9 = smov [#allocation3]   ;;  %s192_s13 = scalar_lea.hbm %s336_s0, 256 }
   0x3   :  { %s15_s10 = sshll.u32 %s264_s9, 4  ;;  %p193_p0 = scmp.ne.s32.totalorder %s336_s0, %s192_s13  ;;  %s16_s10 = int_to_ptr.vmem [resolvable:$true] %s15_s10 }
   0x4   :  { %p196_p1 = scmp.lt.u32.totalorder %s192_s13, %s336_s0 }
   0x6   :  { %p198_p2 = pnand %p196_p1, %p193_p0 }
   0x8   :  { %201 = shalt.err (!%p198_p2)
}
   0x9   :  { %s202_s18 = scalar_lea.vmem %s16_s10, 256  ;;  %p207_p4 = scmp.lt.s32.totalorder %s16_s10, %s16_s10 }
   0xa   :  { %p203_p3 = scmp.ne.s32.totalorder %s16_s10, %s202_s18  ;;  %p208_p5 = scmp.lt.s32.totalorder %s202_s18, %s202_s18 }
   0xc   :  { %p209_p6 = por %p208_p5, %p207_p4 }
   0xe   :  { %p210_p7 = pnand %p209_p6, %p203_p3 }
  0x10   :  { %213 = shalt.err (!%p210_p7)
}
  0x11   :  { %s265_s19 = smov 128   ;;  %s266_s20 = smov 8  }
  0x12   :  { %21 = dma.hbm_to_vmem [thread:$0]  %s336_s0, 256, %s16_s10, [#allocation4], %s265_s19, %s265_s19, %s266_s20  }
  0x13   :  { %s267_s23 = smov [#allocation6]   ;;  %s214_s27 = scalar_lea.hbm %s337_s1, 384 }
  0x14   :  { %s27_s24 = sshll.u32 %s267_s23, 4  ;;  %p215_p8 = scmp.ne.s32.totalorder %s337_s1, %s214_s27  ;;  %s28_s24 = int_to_ptr.vmem [resolvable:$true] %s27_s24 }
  0x15   :  { %p218_p9 = scmp.lt.u32.totalorder %s214_s27, %s337_s1 }
  0x17   :  { %p220_p10 = pnand %p218_p9, %p215_p8 }
  0x19   :  { %223 = shalt.err (!%p220_p10)
}
  0x1a   :  { %s224_s4 = scalar_lea.vmem %s28_s24, 384  ;;  %p229_p12 = scmp.lt.s32.totalorder %s28_s24, %s28_s24 }
  0x1b   :  { %p225_p11 = scmp.ne.s32.totalorder %s28_s24, %s224_s4  ;;  %p230_p13 = scmp.lt.s32.totalorder %s224_s4, %s224_s4 }
  0x1d   :  { %p231_p0 = por %p230_p13, %p229_p12 }
  0x1f   :  { %p232_p1 = pnand %p231_p0, %p225_p11 }
  0x21   :  { %235 = shalt.err (!%p232_p1)
}
  0x22   :  { %33 = dma.hbm_to_vmem [thread:$0]  %s337_s1, 384, %s28_s24, [#allocation7], %s265_s19, %s265_s19, %s266_s20  }
  0x23   :  { %258 = dma.done.wait [#allocation4], 256  }
  0x24   :  { %259 = vsyncadd [#allocation4], 4294967040 }
  0x25   :  { %260 = dma.done.wait [#allocation7], 384  }
  0x26   :  { %261 = vsyncadd [#allocation7], 4294966912  ;;  %vm44_vm0 = vcmask 523264   ;;  %v268_v0 = vmov 0.0   ;;  %vm54_vm1 = vcmask 195584   ;;  %v51_v1 = vld [vmem:[#allocation6] sm:$0xff] }
  0x27   :  { %46 = vst.msk [vmem:[#allocation2 + $0x8] sm:$0xff] %vm44_vm0, %v268_v0  ;;  %45 = vst.msk [vmem:[#allocation2] sm:$0xff] %vm44_vm0, %v268_v0  ;;  %v52_v2 = vld [vmem:[#allocation6 + $0x8] sm:$0xff]  ;;  %v49_v4 = vld [vmem:[#allocation3] sm:$0xff]  ;;  %s269_s1 = smov [#allocation8]  }
  0x28   :  { %v182_v3 = vpack.c.bf16 %v52_v2, %v51_v1  ;;  %v53_v5 = vld [vmem:[#allocation6 + $0x10] sm:$0xff]  ;;  %179 = vmatprep.mubr.msk.f32.mxu0 %vm54_vm1, %v49_v4  ;;  %v50_v6 = vld [vmem:[#allocation3 + $0x8] sm:$0xff]  ;;  %s153_s6 = sshll.u32 %s269_s1, 4  ;;  %s154_s6 = int_to_ptr.vmem [resolvable:$true] %s153_s6 }
  0x29   :  { %s236_s7 = scalar_lea.vmem %s154_s6, 256  ;;  %p241_p3 = scmp.lt.s32.totalorder %s154_s6, %s154_s6 }
  0x2a   :  { %183 = vmatprep.subr.bf16.mxu0 %v182_v3  ;;  %p237_p2 = scmp.ne.s32.totalorder %s154_s6, %s236_s7  ;;  %p242_p4 = scmp.lt.s32.totalorder %s236_s7, %s236_s7 }
  0x2b   :  { %185 = vmatpush3.bf16.msra.mxu0 %v182_v3 }
  0x2c   :  { %177 = vmatprep.subr.mxu0 %v53_v5  ;;  %p243_p5 = por %p242_p4, %p241_p3 }
  0x2e   :  { %v48_v7 = vld [vmem:[#allocation2 + $0x8] sm:$0xff]  ;;  %v47_v8 = vld [vmem:[#allocation2] sm:$0xff]  ;;  %p244_p6 = pnand %p243_p5, %p237_p2 }
  0x2f   :  { %178 = vmatpush3.msra.mxu0 %v53_v5 }
  0x30   :  { %180 = vmatmul.mubr.msk.f32.vlgmr.msra.gmra.mrb[0].mxu0 %vm54_vm1, %v50_v6 }
 0x103   :  { %v181_v9 = vpop.f32.mrb[0].mxu0 }
 0x104   :  { %v137_v10 = vadd.f32 %v181_v9, %v48_v7  ;;  %v127_v11 = vpop.f32.mrb[1].mxu0 }
 0x105   :  { %v136_v12 = vadd.f32 %v127_v11, %v47_v8 }
 0x106   :  { %140 = vst.msk [vmem:[#allocation2 + $0x8] sm:$0xff] %vm44_vm0, %v137_v10 }
 0x107   :  { %139 = vst.msk [vmem:[#allocation2] sm:$0xff] %vm44_vm0, %v136_v12 }
 0x10d   :  { %v145_v13 = vld [vmem:[#allocation2 + $0x8] sm:$0xff] }
 0x10e   :  { %v144_v14 = vld [vmem:[#allocation2] sm:$0xff]  ;;  %147 = vst.msk [vmem:[#allocation8 + $0x8] sm:$0xff] %vm44_vm0, %v145_v13 }
 0x10f   :  { %146 = vst.msk [vmem:[#allocation8] sm:$0xff] %vm44_vm0, %v144_v14 }
 0x110   :  { %247 = shalt.err (!%p244_p6)
}
 0x111   :  { %s248_s10 = scalar_lea.hbm %s338_s2, 256 }
 0x112   :  { %p249_p7 = scmp.ne.s32.totalorder %s338_s2, %s248_s10  ;;  %p252_p8 = scmp.lt.u32.totalorder %s248_s10, %s338_s2 }
 0x114   :  { %p254_p9 = pnand %p252_p8, %p249_p7 }
 0x116   :  { %257 = shalt.err (!%p254_p9)
}
 0x117   :  { %159 = dma.vmem_to_hbm [thread:$0]  %s154_s6, 256, %s338_s2, [#allocation5], %s265_s19, %s265_s19, %s266_s20  }
 0x118   :  { %262 = dma.done.wait [#allocation5], 256  }
 0x119   :  { %263 = vsyncadd [#allocation5], 4294967040 }
 0x11a   :  { %163 = vsyncpa [#allocation4], 1 }
 0x11b   :  { %164 = vsyncpa [#allocation7], 1 }
 0x11c   :  { %165 = vsyncpa [#allocation5], 1 }

</bundles_post_ra>
